<compile_context>
chip_gen: v5e
topology: v5e:2x2
jax: 0.10.0
libtpu: 0.0.40
codegen_flags: <defaults>
</compile_context>

<pallas_src>
import numpy as np

import jax
import jax.numpy as jnp
from jax import lax
from jax.experimental import pallas as pl
from jax.experimental.pallas import tpu as pltpu


def _round_up(x, m):
    return (x + m - 1) // m * m


def _pick_tile(total, candidates, min_blocks=1):
    for t in candidates:
        if total % t == 0 and total // t >= min_blocks:
            return t
    return total


def _vmem_capacity_bytes():
    """Per-generation VMEM capacity; conservative 64 MiB fallback (v7x)."""
    try:
        info = pltpu.get_tpu_info()
        for name in ("vmem_capacity_bytes", "vmem_size_bytes", "vmem_bytes"):
            v = getattr(info, name, None)
            if v:
                return int(v)
    except Exception:
        pass
    return 64 * 1024 * 1024


def _make_kernel(tk, b_resident, add_bias, upcast_a):
    """O = diag(rscale) @ (A @ B) [+ bias], tiled over (row tiles, k tiles)."""

    def kernel(a_ref, b_ref, rscale_ref, *rest):
        if add_bias:
            bias_ref, o_ref, acc_ref = rest
        else:
            o_ref, acc_ref = rest
        kb = pl.program_id(1)

        @pl.when(kb == 0)
        def _init():
            acc_ref[...] = jnp.zeros_like(acc_ref)

        a = a_ref[...]
        if upcast_a:
            # int8 adj tile: DMA narrow, upcast on the VPU (hidden under DMA).
            a = a.astype(jnp.float32).astype(jnp.bfloat16)

        if b_resident:
            # Whole B lives in VMEM; slice the contraction chunk in place.
            off = pl.multiple_of(kb * tk, 128)
            b = b_ref[pl.ds(off, tk), :]
        else:
            b = b_ref[...]

        acc_ref[...] += jnp.dot(a, b, preferred_element_type=jnp.float32)

        @pl.when(kb == pl.num_programs(1) - 1)
        def _finalize():
            out = acc_ref[...] * rscale_ref[...]
            if add_bias:
                out = out + bias_ref[...]
            o_ref[...] = out.astype(o_ref.dtype)

    return kernel


def _scaled_matmul(a, b, rscale, bias, *, tm, tk, out_dtype, vmem_cap):
    """Tiled O = diag(rscale) @ A @ B (+ bias) on the TPU MXU.

    a: (M, K) int8 or bf16, b: (K, Nd) bf16, rscale: (M, 1) f32,
    bias: (1, Nd) f32 or None.  M % tm == 0, K % tk == 0, Nd % 128 == 0.
    """
    m, kk = a.shape
    kb, nd = b.shape
    assert kb == kk and m % tm == 0 and kk % tk == 0 and nd % 128 == 0

    a_bytes = np.dtype(a.dtype).itemsize
    b_bytes = np.dtype(b.dtype).itemsize
    out_bytes = np.dtype(out_dtype).itemsize
    add_bias = bias is not None
    upcast_a = np.dtype(a.dtype) != np.dtype(jnp.bfloat16)

    # Keep the whole B resident in VMEM when it comfortably fits (removes the
    # per-row-tile re-DMA of the feature matrix); otherwise stream tiles.
    b_resident = (2 * kk * nd * b_bytes) <= int(0.35 * vmem_cap)

    if b_resident:
        b_spec = pl.BlockSpec((kk, nd), lambda i, k: (0, 0))
        b_footprint = 2 * kk * nd * b_bytes
    else:
        b_spec = pl.BlockSpec((tk, nd), lambda i, k: (k, 0))
        b_footprint = 2 * tk * nd * b_bytes

    in_specs = [
        pl.BlockSpec((tm, tk), lambda i, k: (i, k)),   # A tile
        b_spec,                                        # B (resident or tiled)
        pl.BlockSpec((tm, 1), lambda i, k: (i, 0)),    # row scale
    ]
    args = [a, b, rscale]
    if add_bias:
        in_specs.append(pl.BlockSpec((1, nd), lambda i, k: (0, 0)))  # bias
        args.append(bias)

    # Exact double-buffered footprint + headroom, capped per generation.
    footprint = (2 * tm * tk * a_bytes + b_footprint
                 + 2 * tm * 4
                 + (2 * nd * 4 if add_bias else 0)
                 + 2 * tm * nd * out_bytes
                 + tm * nd * 4)
    vmem_limit = int(min(max(2 * footprint + (4 << 20), 16 << 20),
                         int(0.85 * vmem_cap)))

    return pl.pallas_call(
        _make_kernel(tk, b_resident, add_bias, upcast_a),
        out_shape=jax.ShapeDtypeStruct((m, nd), out_dtype),
        grid_spec=pltpu.PrefetchScalarGridSpec(
            num_scalar_prefetch=0,
            grid=(m // tm, kk // tk),
            in_specs=in_specs,
            out_specs=pl.BlockSpec((tm, nd), lambda i, k: (i, 0)),
            scratch_shapes=[pltpu.VMEM((tm, nd), jnp.float32)],
        ),
        compiler_params=pltpu.CompilerParams(
            dimension_semantics=("parallel", "arbitrary"),
            vmem_limit_bytes=vmem_limit,
        ),
    )(*args)


def sgconv_forward(adj, feat, weight, bias, *, k=1):
    """SGConv forward.

    adj:    (N, N)  float, adj[dst, src] = 1 iff edge src -> dst
    feat:   (N, D_in) float
    weight: (D_out, D_in) nn.Linear weight
    bias:   (D_out,)
    """
    n, d_in = feat.shape
    d_out = weight.shape[0]

    adj = jnp.asarray(adj, jnp.float32)
    feat = jnp.asarray(feat, jnp.float32)
    weight = jnp.asarray(weight, jnp.float32)
    bias = jnp.asarray(bias, jnp.float32)

    # Symmetric degree normalization D^{-1/2}, precomputed in the wrapper
    # (no in-kernel XLU row reduction over adj).
    degs = jnp.maximum(jnp.sum(adj, axis=1, keepdims=True), 1.0)
    norm = lax.rsqrt(degs)                                      # (N, 1)

    vmem_cap = _vmem_capacity_bytes()

    # Padded / tiled sizes (all (8,128)-friendly; output stays lane-dense).
    n_p = _round_up(n, 256)
    d_in_p = _round_up(max(d_in, 128), 128)
    d_out_p = _round_up(max(d_out, 128), 128)
    # Row tile: as large as possible while keeping >= 2 blocks on the parallel
    # axis so both TensorCores get work on v7x.
    tm = _pick_tile(n_p, (1024, 512, 256, 128), min_blocks=2)
    tk_hop = _pick_tile(n_p, (1024, 512, 256))         # hop contraction tile
    tk_fc = _pick_tile(d_in_p, (1024, 512, 256, 128))  # fc contraction tile

    # Zero-pad: padded nodes have zero adjacency rows/cols and zero features,
    # so real outputs are unchanged; padded rows/cols are sliced away below.
    # adj is stored as int8 (0/1 exact) to halve the dominant HBM traffic.
    adj_p = jnp.zeros((n_p, n_p), jnp.int8).at[:n, :n].set(
        adj.astype(jnp.int8))
    feat_p = jnp.zeros((n_p, d_in_p), jnp.bfloat16).at[:n, :d_in].set(
        feat.astype(jnp.bfloat16))
    w_t_p = jnp.zeros((d_in_p, d_out_p), jnp.bfloat16).at[:d_in, :d_out].set(
        weight.T.astype(jnp.bfloat16))
    bias_p = jnp.zeros((1, d_out_p), jnp.float32).at[0, :d_out].set(bias)
    norm_p = jnp.ones((n_p, 1), jnp.float32).at[:n, :].set(norm)
    norm2_p = norm_p * norm_p
    ones_rows = jnp.ones((n_p, 1), jnp.float32)

    # fc first (exact: diag-normalized propagation commutes with @ W^T); the
    # first hop's column norm is folded into this call's row scale, so the
    # hop kernels never rescale B.
    h = _scaled_matmul(
        feat_p, w_t_p,
        ones_rows if k == 0 else norm_p,
        bias_p if k == 0 else None,
        tm=tm, tk=tk_fc,
        out_dtype=jnp.float32 if k == 0 else jnp.bfloat16,
        vmem_cap=vmem_cap,
    )

    # k propagation hops.  With the column norm folded into the previous
    # call's row scale, each hop is h <- diag(r) @ adj @ h with
    # r = norm*norm for intermediate hops and r = norm (+ bias) for the last.
    for hop in range(k):
        last = hop == k - 1
        h = _scaled_matmul(
            adj_p, h,
            norm_p if last else norm2_p,
            bias_p if last else None,
            tm=tm, tk=tk_hop,
            out_dtype=jnp.float32 if last else jnp.bfloat16,
            vmem_cap=vmem_cap,
        )

    return h[:n, :d_out]


def _reference(adj, feat, weight, bias, k):
    degs = jnp.maximum(adj.sum(axis=1, keepdims=True), 1.0)
    norm = degs ** -0.5
    h = feat
    for _ in range(k):
        h = h * norm
        h = adj @ h
        h = h * norm
    return h @ weight.T + bias[None, :]


if __name__ == "__main__":
    key = jax.random.PRNGKey(0)
    k_adj, k_feat, k_w, k_b = jax.random.split(key, 4)

    N = 500          # nodes (exercises padding to 512)
    in_feats = 96    # padded to 128
    out_feats = 40   # padded to 128 (lane-dense), sliced back
    K = 2            # hops

    # Random directed graph as dense aggregation matrix (dst, src).
    adj = (jax.random.uniform(k_adj, (N, N)) < 0.02).astype(jnp.float32)
    feat = jax.random.normal(k_feat, (N, in_feats), dtype=jnp.float32)

    # nn.Linear(in_feats, out_feats) init: U(-1/sqrt(in), 1/sqrt(in))
    bound = 1.0 / (in_feats ** 0.5)
    weight = jax.random.uniform(
        k_w, (out_feats, in_feats), minval=-bound, maxval=bound,
        dtype=jnp.float32)
    bias = jax.random.uniform(
        k_b, (out_feats,), minval=-bound, maxval=bound, dtype=jnp.float32)

    out = sgconv_forward(adj, feat, weight, bias, k=K)
    out = jax.block_until_ready(out)

    ref = _reference(adj, feat, weight, bias, K)
    assert out.shape == (N, out_feats)
    max_err = jnp.max(jnp.abs(out - ref))
    assert jnp.allclose(out, ref, atol=2e-2, rtol=2e-2), (
        f"mismatch vs reference (max abs err {max_err})")

    print("KERNEL_OK")
</pallas_src>

<mosaic_0001>
module attributes {stable_mosaic.version = 11 : i64} {
  func.func @kernel(%arg0: i32, %arg1: i32, %arg2: memref<256x128xbf16, #tpu.memory_space<vmem>>, %arg3: memref<128x128xbf16, #tpu.memory_space<vmem>>, %arg4: memref<256x1xf32, #tpu.memory_space<vmem>>, %arg5: memref<256x128xbf16, #tpu.memory_space<vmem>>, %arg6: memref<256x128xf32, #tpu.memory_space<vmem>>) attributes {dimension_semantics = [#tpu.dimension_semantics<parallel>, #tpu.dimension_semantics<arbitrary>], iteration_bounds = array<i64: 2, 1>, scalar_prefetch = 0 : i64, scratch_operands = 1 : i64, tpu.core_type = #tpu.core_type<tc>, window_params = [{transform_indices = @transform_0, window_bounds = array<i64: 256, 128>}, {pipeline_mode = #tpu.pipeline_mode<synchronous>, transform_indices = @transform_1, window_bounds = array<i64: 128, 128>}, {transform_indices = @transform_2, window_bounds = array<i64: 256, 1>}, {transform_indices = @transform_3, window_bounds = array<i64: 256, 128>}]} {
    %c0_i32 = arith.constant 0 : i32
    %0 = arith.cmpi eq, %arg1, %c0_i32 : i32
    %1 = arith.extui %0 : i1 to i32
    %c0_i32_0 = arith.constant 0 : i32
    %2 = arith.cmpi ne, %1, %c0_i32_0 : i32
    scf.if %2 {
      %cst_9 = arith.constant 0.000000e+00 : f32
      %15 = vector.broadcast %cst_9 : f32 to vector<256x128xf32>
      %c0_10 = arith.constant 0 : index
      %c0_11 = arith.constant 0 : index
      %16 = vector.load %arg6[%c0_10, %c0_11] : memref<256x128xf32, #tpu.memory_space<vmem>>, vector<256x128xf32>
      tpu.vector_store %arg6[%c0_10, %c0_11], %15 {strides = array<i32>} : memref<256x128xf32, #tpu.memory_space<vmem>>, vector<256x128xf32>,
    } else {
    }
    %c0 = arith.constant 0 : index
    %c0_1 = arith.constant 0 : index
    %3 = vector.load %arg2[%c0, %c0_1] : memref<256x128xbf16, #tpu.memory_space<vmem>>, vector<256x128xbf16>
    %c128_i32 = arith.constant 128 : i32
    %4 = arith.muli %arg1, %c128_i32 : i32
    %5 = tpu.assume_multiple %4, 128 : i32
    %6 = arith.index_cast %5 : i32 to index
    %c0_2 = arith.constant 0 : index
    %7 = vector.load %arg3[%6, %c0_2] : memref<128x128xbf16, #tpu.memory_space<vmem>>, vector<128x128xbf16>
    %c0_3 = arith.constant 0 : index
    %c0_4 = arith.constant 0 : index
    %8 = vector.load %arg6[%c0_3, %c0_4] : memref<256x128xf32, #tpu.memory_space<vmem>>, vector<256x128xf32>
    %cst = arith.constant dense<0.000000e+00> : vector<256x128xf32>
    %9 = tpu.matmul %3, %7, %cst {dimension_numbers = #tpu.dot_dimension_numbers<[1], [0], [0], [1], [0, 0, 1, 1], [], []>} : vector<256x128xbf16>, vector<128x128xbf16>, vector<256x128xf32> -> vector<256x128xf32>
    %10 = arith.addf %8, %9 : vector<256x128xf32>
    %c0_5 = arith.constant 0 : index
    %c0_6 = arith.constant 0 : index
    %11 = vector.load %arg6[%c0_5, %c0_6] : memref<256x128xf32, #tpu.memory_space<vmem>>, vector<256x128xf32>
    tpu.vector_store %arg6[%c0_5, %c0_6], %10 {strides = array<i32>} : memref<256x128xf32, #tpu.memory_space<vmem>>, vector<256x128xf32>,
    %c0_i32_7 = arith.constant 0 : i32
    %12 = arith.cmpi eq, %arg1, %c0_i32_7 : i32
    %13 = arith.extui %12 : i1 to i32
    %c0_i32_8 = arith.constant 0 : i32
    %14 = arith.cmpi ne, %13, %c0_i32_8 : i32
    scf.if %14 {
      %c0_9 = arith.constant 0 : index
      %c0_10 = arith.constant 0 : index
      %15 = vector.load %arg6[%c0_9, %c0_10] : memref<256x128xf32, #tpu.memory_space<vmem>>, vector<256x128xf32>
      %c0_11 = arith.constant 0 : index
      %c0_12 = arith.constant 0 : index
      %16 = vector.load %arg4[%c0_11, %c0_12] : memref<256x1xf32, #tpu.memory_space<vmem>>, vector<256x1xf32>
      %17 = vector.broadcast %16 : vector<256x1xf32> to vector<256x128xf32>
      %18 = arith.mulf %15, %17 : vector<256x128xf32>
      %19 = arith.truncf %18 : vector<256x128xf32> to vector<256x128xbf16>
      %c0_13 = arith.constant 0 : index
      %c0_14 = arith.constant 0 : index
      %20 = vector.load %arg5[%c0_13, %c0_14] : memref<256x128xbf16, #tpu.memory_space<vmem>>, vector<256x128xbf16>
      tpu.vector_store %arg5[%c0_13, %c0_14], %19 {strides = array<i32>} : memref<256x128xbf16, #tpu.memory_space<vmem>>, vector<256x128xbf16>,
    } else {
    }
    return
  }
  func.func @transform_0(%arg0: i32, %arg1: i32) -> (i32, i32) {
    %c0_i32 = arith.constant 0 : i32
    return %arg0, %arg1 : i32, i32
  }
  func.func @transform_1(%arg0: i32, %arg1: i32) -> (i32, i32) {
    %c0_i32 = arith.constant 0 : i32
    %c0_i32_0 = arith.constant 0 : i32
    %c0_i32_1 = arith.constant 0 : i32
    return %c0_i32, %c0_i32_0 : i32, i32
  }
  func.func @transform_2(%arg0: i32, %arg1: i32) -> (i32, i32) {
    %c0_i32 = arith.constant 0 : i32
    %c0_i32_0 = arith.constant 0 : i32
    return %arg0, %c0_i32 : i32, i32
  }
  func.func @transform_3(%arg0: i32, %arg1: i32) -> (i32, i32) {
    %c0_i32 = arith.constant 0 : i32
    %c0_i32_0 = arith.constant 0 : i32
    return %arg0, %c0_i32 : i32, i32
  }
}

</mosaic_0001>

<bundles_post_ra>
// kernel: tpu_custom_call.1
= control target key start
LH: loop header
LB: loop body
LE: loop exit
PB: predicated region body
PF: predicated region fallthrough
CT: control target
= control target key end

     0   :  { %8 = vsyncpa [#allocation4], 0  ;;  %s1712_s0 = inlined_call_operand.vmem [shape: bf16[512,128], index: 0, kind: input, shape index: {}]   ;;  %s1713_s1 = inlined_call_operand.vmem [shape: bf16[128,128], index: 1, kind: input, shape index: {}]   ;;  %s1714_s2 = inlined_call_operand.vmem [shape: f32[512,1], index: 2, kind: input, shape index: {}]   ;;  %s1715_s3 = inlined_call_operand.hbm [shape: bf16[512,128], index: 3, kind: output, shape index: {}]  }
   0x1   :  { %10 = vsyncpa [#allocation4 + $0x1], 0  ;;  %s1480_s12 = smov 0   ;;  %s1482_s13 = smov 0  }
   0x2   :  { %s1484_s14 = smov 0   ;;  %s1486_s15 = smov 0  }
   0x3   :  { %s1488_s16 = smov 0   ;;  %s1490_s17 = smov 0  }
   0x4 LB: > { %s1061_s18 = sadd.s32 4294967295, %s1455_s17   ;;  %s1062_s19 = sadd.s32 4294967294, %s1455_s17   ;;  %s1455_s17 = sphi %s1490_s17, %s16_s17   ;;  %s1451_s16 = sphi %s1488_s16, %s1722_s16   ;;  %s1447_s15 = sphi %s1486_s15, %s1721_s15   ;;  %s1443_s14 = sphi %s1484_s14, %s1720_s14   ;;  %s1439_s13 = sphi %s1482_s13, %s1719_s13   ;;  %s1435_s12 = sphi %s1480_s12, %s1718_s12  }
   0x5   : > { %s28_s20 = sadd.s32 1, %s1451_s16  ;;  %s110_s21 = sadd.s32 1, %s1443_s14 }
   0x6   : > { %p30_p0 = scmp.ge.s32.totalorder %s28_s20, 2  ;;  %p120_p1 = scmp.ne.s32.totalorder %s1443_s14, %s1439_s13 }
   0x7   : > { %p121_p2 = scmp.eq.s32.totalorder %s1061_s18, 1  ;;  %p126_p3 = scmp.ne.s32.totalorder %s1439_s13, %s1435_s12 }
   0x8   : > { %s1724_s20 = smov (%p30_p0, %s28_s20), 0  ;;  %p127_p5 = scmp.eq.s32.totalorder %s1062_s19, 1 }
   0x9   : > { %p1520_p4 = por %p121_p2, %p120_p1  ;;  %s107_s23 = ssub.s32 %s1451_s16, %s1724_s20 }
   0xa   : > { %p1065_p6 = scmp.ge.s32.totalorder %s1455_s17, 1  ;;  %p108_p7 = scmp.eq.s32.totalorder %s107_s23, 0 }
   0xb   : > { %p1527_p8 = por %p127_p5, %p126_p3  ;;  %p169_p9 = scmp.lt.s32.totalorder %s1455_s17, 3 }
   0xc   : > { %s1533_s25 = scalar_select %p108_p7, %s1443_s14, %s110_s21  }
   0xd   : > { %p170_p10 = pnand %p1065_p6, %p169_p9 }
   0xe   : > { %s1067_s28 = sshll.u32 (!%p170_p10), %s1447_s15, 5  ;;  %s1196_s10 = sshll.u32 (!%p170_p10), %s1447_s15, 7 }
   0xf   : > { %173 = sbr.rel (%p170_p10) target bundleno = 251 (0xfb), region = 32  ;;  %p202_p11 = scmp.lt.s32.totalorder (!%p170_p10), %s1067_s28, 63 }
  0x10   : > { %s970_s19 = scalar_lea.hbm (!%p170_p10), %s1715_s3, %s1196_s10 }
  0x11   : > { %s973_s23 = sshll.u32 (!%p170_p10), %s970_s19, 4  ;;  %s974_s23 = int_to_ptr.hbm [resolvable:$true] %s973_s23 }
  0x12   : > { %s1391_s26 = sshra.s32 (!%p170_p10), %s974_s23, 4  ;;  %s1392_s26 = int_to_ptr.hbm [resolvable:$true] %s1391_s26 }
  0x13   : > { %s1393_s27 = scalar_lea.hbm (!%p170_p10), %s1392_s26, 128  ;;  %p1398_p1 = scmp.lt.s32.totalorder (!%p170_p10), %s1392_s26, %s1715_s3 }
  0x14   : > { %v1195_v0 = vld [vmem:[%s1713_s1 + $0x38] sm:$0xff]  ;;  %v1457_v1 = vmov 0   ;;  %v1194_v2 = vld [vmem:[%s1713_s1 + $0x30] sm:$0xff]  ;;  %s1726_s28 = smov (!%p202_p11, %s1067_s28), 63  ;;  %v1193_v3 = vld [vmem:[%s1713_s1 + $0x28] sm:$0xff]  ;;  %p1394_p12 = scmp.ne.s32.totalorder %s1392_s26, %s1393_s27 }
  0x15   : > { %1376 = vset.pattern.permute.xlu2 %v1457_v1  ;;  %1375 = vset.pattern.permute.xlu1 %v1457_v1  ;;  %s1070_s4 = sshll.u32 %s1726_s28, 3  ;;  %v1192_v7 = vld [vmem:[%s1713_s1 + $0x20] sm:$0xff]  ;;  %v1191_v11 = vld [vmem:[%s1713_s1 + $0x18] sm:$0xff]  ;;  %v1190_v12 = vld [vmem:[%s1713_s1 + $0x10] sm:$0xff]  ;;  %s1068_s29 = sshll.u32 %s1726_s28, 2 }
  0x16   : > { %482 = vmatpush.bf16.msra.mxu0 %v1195_v0  ;;  %1292 = vmatpush.bf16.msra.mxu1 %v1195_v0  ;;  %s1548_s7 = scalar_lea.vmem %s1714_s2, %s1070_s4  ;;  %v1189_v16 = vld [vmem:[%s1713_s1 + $0x8] sm:$0xff]  ;;  %v1188_v17 = vld [vmem:[%s1713_s1] sm:$0xff]  ;;  %s1581_s8 = scalar_lea.vmem %s1712_s0, %s1068_s29 }
  0x17   : > { %1293 = vmatpush.bf16.msra.mxu2 %v1195_v0  ;;  %1294 = vmatpush.bf16.msra.mxu3 %v1195_v0  ;;  %v674_v4 = vld [vmem:[%s1548_s7 + $0x20] sm:$0xff]  ;;  %v672_v5 = vld [vmem:[%s1548_s7 + $0x10] sm:$0xff]  ;;  %v675_v8 = vld [vmem:[%s1548_s7 + $0x28] sm:$0xff]  ;;  %s198_s28 = sand.u32 1, %s1439_s13   ;;  %p1395_p13 = pnand %p1394_p12, %p1520_p4 }
  0x18   : > { %1374 = vset.pattern.permute.xlu0 %v1457_v1  ;;  %v670_v6 = vld [vmem:[%s1548_s7] sm:$0xff]  ;;  %724 = vperm.xlu2 %1376, %v674_v4   ;;  %v673_v9 = vld [vmem:[%s1548_s7 + $0x18] sm:$0xff]  ;;  %v671_v10 = vld [vmem:[%s1548_s7 + $0x8] sm:$0xff]  ;;  %s959_s15 = scalar_lea.sflag [#allocation4], %s198_s28  ;;  %s1397_s4 = scalar_lea.hbm %s1715_s3, 256 }
  0x19   : > { %714 = vperm.xlu1 %1375, %v672_v5   ;;  %704 = vperm.xlu0 %1374, %v670_v6   ;;  %v678_v13 = vld [vmem:[%s1548_s7 + $0x40] sm:$0xff]  ;;  %v677_v14 = vld [vmem:[%s1548_s7 + $0x38] sm:$0xff]  ;;  %v676_v15 = vld [vmem:[%s1548_s7 + $0x30] sm:$0xff]  ;;  %p1396_p0 = pneg %p1395_p13  ;;  %p1399_p2 = scmp.lt.s32.totalorder %s1397_s4, %s1393_s27 }
  0x1a   : > { %483 = vmatpush.bf16.msra.mxu0 %v1194_v2  ;;  %1295 = vmatpush.bf16.msra.mxu1 %v1194_v2  ;;  %v681_v18 = vld [vmem:[%s1548_s7 + $0x58] sm:$0xff]  ;;  %v680_v19 = vld [vmem:[%s1548_s7 + $0x50] sm:$0xff]  ;;  %v1172_v20 = vld [vmem:[%s1581_s8] sm:$0xff] }
  0x1b   : > { %1296 = vmatpush.bf16.msra.mxu2 %v1194_v2  ;;  %1297 = vmatpush.bf16.msra.mxu3 %v1194_v2  ;;  %v679_v21 = vld [vmem:[%s1548_s7 + $0x48] sm:$0xff]  ;;  %v1176_v22 = vld [vmem:[%s1581_s8 + $0x20] sm:$0xff]  ;;  %v684_v25 = vld [vmem:[%s1548_s7 + $0x70] sm:$0xff]  ;;  %p1400_p3 = por %p1399_p2, %p1398_p1 }
  0x1c   : > { %v1180_v23 = vld [vmem:[%s1581_s8 + $0x40] sm:$0xff]  ;;  %v683_v26 = vld [vmem:[%s1548_s7 + $0x68] sm:$0xff]  ;;  %v685_v31 = vld [vmem:[%s1548_s7 + $0x78] sm:$0xff] }
  0x1d   : > { %v1184_v24 = vld [vmem:[%s1581_s8 + $0x60] sm:$0xff]  ;;  %v687_v28 = vld [vmem:[%s1548_s7 + $0x88] sm:$0xff]  ;;  %v689_v36 = vld [vmem:[%s1548_s7 + $0x98] sm:$0xff]  ;;  %p1401_p5 = pnand %p1400_p3, %p1396_p0 }
  0x1e   : > { %484 = vmatpush.bf16.msra.mxu0 %v1193_v3  ;;  %1298 = vmatpush.bf16.msra.mxu1 %v1193_v3  ;;  %v682_v27 = vld [vmem:[%s1548_s7 + $0x60] sm:$0xff]  ;;  %v1173_v30 = vld [vmem:[%s1581_s8 + $0x8] sm:$0xff]  ;;  %v688_v37 = vld [vmem:[%s1548_s7 + $0x90] sm:$0xff] }
  0x1f   : > { %1299 = vmatpush.bf16.msra.mxu2 %v1193_v3  ;;  %1300 = vmatpush.bf16.msra.mxu3 %v1193_v3  ;;  %v686_v29 = vld [vmem:[%s1548_s7 + $0x80] sm:$0xff]  ;;  %v1177_v32 = vld [vmem:[%s1581_s8 + $0x28] sm:$0xff]  ;;  %v693_v38 = vld [vmem:[%s1548_s7 + $0xb8] sm:$0xff] }
  0x20   : > { %729 = vperm.xlu2 %1376, %v675_v8   ;;  %v1181_v33 = vld [vmem:[%s1581_s8 + $0x48] sm:$0xff]  ;;  %v690_v35 = vld [vmem:[%s1548_s7 + $0xa0] sm:$0xff]  ;;  %v692_v39 = vld [vmem:[%s1548_s7 + $0xb0] sm:$0xff] }
  0x21   : > { %719 = vperm.xlu1 %1375, %v673_v9   ;;  %709 = vperm.xlu0 %1374, %v671_v10   ;;  %v1185_v34 = vld [vmem:[%s1581_s8 + $0x68] sm:$0xff]  ;;  %v1174_v40 = vld [vmem:[%s1581_s8 + $0x10] sm:$0xff]  ;;  %v694_v47 = vld [vmem:[%s1548_s7 + $0xc0] sm:$0xff] }
  0x22   : > { %485 = vmatpush.bf16.msra.mxu0 %v1192_v7  ;;  %1301 = vmatpush.bf16.msra.mxu1 %v1192_v7  ;;  %v691_v41 = vld [vmem:[%s1548_s7 + $0xa8] sm:$0xff]  ;;  %v1178_v42 = vld [vmem:[%s1581_s8 + $0x30] sm:$0xff]  ;;  %v698_v49 = vld [vmem:[%s1548_s7 + $0xe0] sm:$0xff] }
  0x23   : > { %1302 = vmatpush.bf16.msra.mxu2 %v1192_v7  ;;  %1303 = vmatpush.bf16.msra.mxu3 %v1192_v7  ;;  %v1182_v43 = vld [vmem:[%s1581_s8 + $0x50] sm:$0xff]  ;;  %v695_v46 = vld [vmem:[%s1548_s7 + $0xc8] sm:$0xff]  ;;  %v1175_v50 = vld [vmem:[%s1581_s8 + $0x18] sm:$0xff] }
  0x24   : > { %v1186_v44 = vld [vmem:[%s1581_s8 + $0x70] sm:$0xff]  ;;  %v699_v48 = vld [vmem:[%s1548_s7 + $0xe8] sm:$0xff]  ;;  %v697_v51 = vld [vmem:[%s1548_s7 + $0xd8] sm:$0xff] }
  0x25   : > { %v696_v45 = vld [vmem:[%s1548_s7 + $0xd0] sm:$0xff]  ;;  %v1179_v52 = vld [vmem:[%s1581_s8 + $0x38] sm:$0xff] }
  0x26   : > { %486 = vmatpush.bf16.msra.mxu0 %v1191_v11  ;;  %1304 = vmatpush.bf16.msra.mxu1 %v1191_v11  ;;  %v1183_v53 = vld [vmem:[%s1581_s8 + $0x58] sm:$0xff]  ;;  %v700_v56 = vld [vmem:[%s1548_s7 + $0xf0] sm:$0xff] }
  0x27   : > { %1305 = vmatpush.bf16.msra.mxu2 %v1191_v11  ;;  %1306 = vmatpush.bf16.msra.mxu3 %v1191_v11  ;;  %v1187_v54 = vld [vmem:[%s1581_s8 + $0x78] sm:$0xff] }
  0x28   : > { %744 = vperm.xlu2 %1376, %v678_v13   ;;  %v701_v55 = vld [vmem:[%s1548_s7 + $0xf8] sm:$0xff]  ;;  %s1066_s7 = sshll.u32 %s198_s28, 7 }
  0x29   : > { %739 = vperm.xlu1 %1375, %v677_v14   ;;  %734 = vperm.xlu0 %1374, %v676_v15   ;;  %s1641_s9 = scalar_lea.vmem [#allocation3], %s1066_s7 }
  0x2a   : > { %487 = vmatpush.bf16.msra.mxu0 %v1190_v12  ;;  %1307 = vmatpush.bf16.msra.mxu1 %v1190_v12  ;;  %s971_s21 = sshll.u32 %s1641_s9, 4  ;;  %s972_s21 = int_to_ptr.vmem [resolvable:$true] %s971_s21 }
  0x2b   : > { %1308 = vmatpush.bf16.msra.mxu2 %v1190_v12  ;;  %1309 = vmatpush.bf16.msra.mxu3 %v1190_v12 }
  0x2e   : > { %488 = vmatpush.bf16.msra.mxu0 %v1189_v16  ;;  %1310 = vmatpush.bf16.msra.mxu1 %v1189_v16 }
  0x2f   : > { %1311 = vmatpush.bf16.msra.mxu2 %v1189_v16  ;;  %1312 = vmatpush.bf16.msra.mxu3 %v1189_v16 }
  0x30   : > { %759 = vperm.xlu2 %1376, %v681_v18  }
  0x31   : > { %754 = vperm.xlu1 %1375, %v680_v19   ;;  %749 = vperm.xlu0 %1374, %v679_v21  }
  0x32   : > { %489 = vmatpush.bf16.msra.mxu0 %v1188_v17  ;;  %1313 = vmatpush.bf16.msra.mxu1 %v1188_v17 }
  0x33   : > { %1314 = vmatpush.bf16.msra.mxu2 %v1188_v17  ;;  %1315 = vmatpush.bf16.msra.mxu3 %v1188_v17 }
  0x35   : > { %490 = vmatmul.bf16.vlgmr.msra.gmra.mxu0 %v1172_v20  ;;  %510 = vmatmul.bf16.vlgmr.msra.gmra.mxu1 %v1176_v22 }
  0x36   : > { %530 = vmatmul.bf16.vlgmr.msra.gmra.mxu2 %v1180_v23  ;;  %550 = vmatmul.bf16.vlgmr.msra.gmra.mxu3 %v1184_v24 }
  0x38   : > { %774 = vperm.xlu2 %1376, %v684_v25  }
  0x39   : > { %769 = vperm.xlu1 %1375, %v683_v26   ;;  %764 = vperm.xlu0 %1374, %v682_v27  }
  0x40   : > { %789 = vperm.xlu2 %1376, %v687_v28  }
  0x41   : > { %784 = vperm.xlu1 %1375, %v686_v29   ;;  %779 = vperm.xlu0 %1374, %v685_v31  }
  0x45   : > { %495 = vmatmul.bf16.gmra.mxu0 %v1173_v30  ;;  %515 = vmatmul.bf16.gmra.mxu1 %v1177_v32 }
  0x46   : > { %535 = vmatmul.bf16.gmra.mxu2 %v1181_v33  ;;  %555 = vmatmul.bf16.gmra.mxu3 %v1185_v34 }
  0x48   : > { %804 = vperm.xlu2 %1376, %v690_v35  }
  0x49   : > { %799 = vperm.xlu1 %1375, %v689_v36   ;;  %794 = vperm.xlu0 %1374, %v688_v37  }
  0x50   : > { %819 = vperm.xlu2 %1376, %v693_v38  }
  0x51   : > { %814 = vperm.xlu1 %1375, %v692_v39   ;;  %809 = vperm.xlu0 %1374, %v691_v41  }
  0x55   : > { %500 = vmatmul.bf16.gmra.mxu0 %v1174_v40  ;;  %520 = vmatmul.bf16.gmra.mxu1 %v1178_v42 }
  0x56   : > { %540 = vmatmul.bf16.gmra.mxu2 %v1182_v43  ;;  %560 = vmatmul.bf16.gmra.mxu3 %v1186_v44 }
  0x58   : > { %834 = vperm.xlu2 %1376, %v696_v45  }
  0x59   : > { %829 = vperm.xlu1 %1375, %v695_v46   ;;  %824 = vperm.xlu0 %1374, %v694_v47  }
  0x60   : > { %849 = vperm.xlu2 %1376, %v699_v48  }
  0x61   : > { %844 = vperm.xlu1 %1375, %v698_v49   ;;  %839 = vperm.xlu0 %1374, %v697_v51  }
  0x65   : > { %505 = vmatmul.bf16.gmra.mxu0 %v1175_v50  ;;  %525 = vmatmul.bf16.gmra.mxu1 %v1179_v52 }
  0x66   : > { %545 = vmatmul.bf16.gmra.mxu2 %v1183_v53  ;;  %565 = vmatmul.bf16.gmra.mxu3 %v1187_v54 }
  0x69   : > { %859 = vperm.xlu1 %1375, %v701_v55   ;;  %854 = vperm.xlu0 %1374, %v700_v56  }
  0x72   : > { %v1622_v57 = vpop.permute.xlu2 %724 }
  0x7a   : > { %v1624_v59 = vpop.permute.xlu2 %729 }
  0x82   : > { %v745_v63 = vpop.permute.xlu2 %744 }
  0x8a   : > { %v760_v2 = vpop.permute.xlu2 %759 }
  0x8b   : > { %v715_v58 = vpop.permute.xlu1 %714  ;;  %v705_v60 = vpop.permute.xlu0 %704 }
  0x92   : > { %v1630_v5 = vpop.permute.xlu2 %774 }
  0x93   : > { %v720_v61 = vpop.permute.xlu1 %719  ;;  %v710_v62 = vpop.permute.xlu0 %709 }
  0x9a   : > { %v790_v11 = vpop.permute.xlu2 %789 }
  0x9b   : > { %v1626_v0 = vpop.permute.xlu1 %739  ;;  %v1628_v1 = vpop.permute.xlu0 %734 }
  0xa2   : > { %v805_v25 = vpop.permute.xlu2 %804 }
  0xa3   : > { %v755_v3 = vpop.permute.xlu1 %754  ;;  %v750_v4 = vpop.permute.xlu0 %749 }
  0xaa   : > { %v1648_v41 = vpop.permute.xlu2 %819 }
  0xab   : > { %v1632_v6 = vpop.permute.xlu1 %769  ;;  %v1634_v7 = vpop.permute.xlu0 %764 }
  0xb2   : > { %v491_v8 = vpop.f32.mrf.mxu0  ;;  %v511_v9 = vpop.f32.mrf.mxu1 }
  0xb3   : > { %v785_v10 = vpop.permute.xlu1 %784  ;;  %v1637_v12 = vpop.permute.xlu0 %779  ;;  %v862_v16 = vmul.f32 %v705_v60, %v491_v8  ;;  %v870_v19 = vmul.f32 %v745_v63, %v511_v9 }
  0xb4   : > { %v835_v60 = vpop.permute.xlu2 %834 }
  0xb9   : > { %v531_v13 = vpop.f32.mrf.mxu2  ;;  %v551_v14 = vpop.f32.mrf.mxu3 }
  0xba   : > { %v493_v15 = vpop.f32.mrf.mxu0  ;;  %v513_v18 = vpop.f32.mrf.mxu1  ;;  %v878_v27 = vmul.f32 %v785_v10, %v531_v13 }
  0xbb   : > { %v863_v17 = vmul.f32 %v710_v62, %v493_v15  ;;  %v871_v20 = vmul.f32 %v750_v4, %v513_v18  ;;  %v800_v23 = vpop.permute.xlu1 %799  ;;  %v795_v24 = vpop.permute.xlu0 %794 }
  0xbd   : > { %v1200_v21 = vpack.c.bf16 %v863_v17, %v862_v16  ;;  %v1220_v22 = vpack.c.bf16 %v871_v20, %v870_v19  ;;  %v850_v17 = vpop.permute.xlu2 %849 }
  0xbf   : > { %1201 = vst [vmem:[%s1641_s9] sm:$0xff] %v1200_v21  }
  0xc0   : > { %1280 = vst [vmem:[%s1641_s9 + $0x20] sm:$0xff] %v1220_v22  }
  0xc1   : > { %v533_v26 = vpop.f32.mrf.mxu2  ;;  %v553_v29 = vpop.f32.mrf.mxu3 }
  0xc2   : > { %v879_v28 = vmul.f32 %v790_v11, %v533_v26  ;;  %v496_v30 = vpop.f32.mrf.mxu0  ;;  %v516_v31 = vpop.f32.mrf.mxu1 }
  0xc3   : > { %v1646_v33 = vpop.permute.xlu1 %814  ;;  %v810_v34 = vpop.permute.xlu0 %809  ;;  %v864_v38 = vmul.f32 %v715_v58, %v496_v30  ;;  %v872_v42 = vmul.f32 %v755_v3, %v516_v31 }
  0xc4   : > { %v1240_v32 = vpack.c.bf16 %v879_v28, %v878_v27 }
  0xc6   : > { %1284 = vst [vmem:[%s1641_s9 + $0x40] sm:$0xff] %v1240_v32  }
  0xc9   : > { %v536_v35 = vpop.f32.mrf.mxu2  ;;  %v556_v36 = vpop.f32.mrf.mxu3 }
  0xca   : > { %v498_v37 = vpop.f32.mrf.mxu0  ;;  %v518_v40 = vpop.f32.mrf.mxu1  ;;  %v880_v51 = vmul.f32 %v795_v24, %v536_v35  ;;  %v888_v62 = vmul.f32 %v835_v60, %v556_v36 }
  0xcb   : > { %v865_v39 = vmul.f32 %v720_v61, %v498_v37  ;;  %v873_v43 = vmul.f32 %v760_v2, %v518_v40  ;;  %v830_v46 = vpop.permute.xlu1 %829  ;;  %v825_v48 = vpop.permute.xlu0 %824 }
  0xcc   : > { %v887_v47 = vmul.f32 %v830_v46, %v553_v29  ;;  %v886_v49 = vmul.f32 %v825_v48, %v551_v14 }
  0xcd   : > { %v1205_v44 = vpack.c.bf16 %v865_v39, %v864_v38  ;;  %v1225_v45 = vpack.c.bf16 %v873_v43, %v872_v42 }
  0xce   : > { %v1260_v52 = vpack.c.bf16 %v887_v47, %v886_v49 }
  0xcf   : > { %1277 = vst [vmem:[%s1641_s9 + $0x8] sm:$0xff] %v1205_v44  }
  0xd0   : > { %1281 = vst [vmem:[%s1641_s9 + $0x28] sm:$0xff] %v1225_v45  }
  0xd1   : > { %v538_v50 = vpop.f32.mrf.mxu2  ;;  %v558_v54 = vpop.f32.mrf.mxu3  ;;  %1288 = vst [vmem:[%s1641_s9 + $0x60] sm:$0xff] %v1260_v52  }
  0xd2   : > { %v881_v53 = vmul.f32 %v800_v23, %v538_v50  ;;  %v501_v55 = vpop.f32.mrf.mxu0  ;;  %v521_v56 = vpop.f32.mrf.mxu1 }
  0xd3   : > { %v840_v61 = vpop.permute.xlu0 %839  ;;  %v866_v9 = vmul.f32 %v1622_v57, %v501_v55  ;;  %v874_v13 = vmul.f32 %v1634_v7, %v521_v56  ;;  %v845_v18 = vpop.permute.xlu1 %844 }
  0xd4   : > { %v1245_v58 = vpack.c.bf16 %v881_v53, %v880_v51  ;;  %v889_v63 = vmul.f32 %v840_v61, %v558_v54 }
  0xd6   : > { %1285 = vst [vmem:[%s1641_s9 + $0x48] sm:$0xff] %v1245_v58   ;;  %v1265_v3 = vpack.c.bf16 %v889_v63, %v888_v62 }
  0xd8   : > { %1289 = vst [vmem:[%s1641_s9 + $0x68] sm:$0xff] %v1265_v3  }
  0xd9   : > { %v541_v2 = vpop.f32.mrf.mxu2  ;;  %v561_v4 = vpop.f32.mrf.mxu3 }
  0xda   : > { %v503_v8 = vpop.f32.mrf.mxu0  ;;  %v523_v11 = vpop.f32.mrf.mxu1  ;;  %v882_v20 = vmul.f32 %v805_v25, %v541_v2  ;;  %v890_v22 = vmul.f32 %v845_v18, %v561_v4 }
  0xdb   : > { %v867_v10 = vmul.f32 %v1624_v59, %v503_v8  ;;  %v875_v14 = vmul.f32 %v1632_v6, %v523_v11  ;;  %v860_v36 = vpop.permute.xlu1 %859 }
  0xdd   : > { %v1210_v15 = vpack.c.bf16 %v867_v10, %v866_v9  ;;  %v1230_v16 = vpack.c.bf16 %v875_v14, %v874_v13 }
  0xdf   : > { %1278 = vst [vmem:[%s1641_s9 + $0x10] sm:$0xff] %v1210_v15  }
  0xe0   : > { %1282 = vst [vmem:[%s1641_s9 + $0x30] sm:$0xff] %v1230_v16  }
  0xe1   : > { %v543_v19 = vpop.f32.mrf.mxu2  ;;  %v563_v57 = vpop.f32.mrf.mxu3 }
  0xe2   : > { %v883_v21 = vmul.f32 %v810_v34, %v543_v19  ;;  %v506_v59 = vpop.f32.mrf.mxu0  ;;  %v891_v23 = vmul.f32 %v850_v17, %v563_v57  ;;  %v526_v7 = vpop.f32.mrf.mxu1 }
  0xe3   : > { %v868_v29 = vmul.f32 %v1628_v1, %v506_v59  ;;  %v876_v31 = vmul.f32 %v1630_v5, %v526_v7 }
  0xe4   : > { %v1250_v24 = vpack.c.bf16 %v883_v21, %v882_v20  ;;  %v1270_v6 = vpack.c.bf16 %v891_v23, %v890_v22 }
  0xe6   : > { %1286 = vst [vmem:[%s1641_s9 + $0x50] sm:$0xff] %v1250_v24  }
  0xe7   : > { %1290 = vst [vmem:[%s1641_s9 + $0x70] sm:$0xff] %v1270_v6  }
  0xe9   : > { %v546_v26 = vpop.f32.mrf.mxu2  ;;  %v566_v27 = vpop.f32.mrf.mxu3 }
  0xea   : > { %v508_v28 = vpop.f32.mrf.mxu0  ;;  %v528_v30 = vpop.f32.mrf.mxu1  ;;  %v884_v5 = vmul.f32 %v1646_v33, %v546_v26 }
  0xeb   : > { %v869_v25 = vmul.f32 %v1626_v0, %v508_v28  ;;  %v877_v32 = vmul.f32 %v1637_v12, %v528_v30  ;;  %v855_v0 = vpop.permute.xlu0 %854 }
  0xec   : > { %v892_v38 = vmul.f32 %v855_v0, %v566_v27 }
  0xed   : > { %v1215_v34 = vpack.c.bf16 %v869_v25, %v868_v29  ;;  %v1235_v35 = vpack.c.bf16 %v877_v32, %v876_v31 }
  0xef   : > { %1279 = vst [vmem:[%s1641_s9 + $0x18] sm:$0xff] %v1215_v34  }
  0xf0   : > { %1283 = vst [vmem:[%s1641_s9 + $0x38] sm:$0xff] %v1235_v35  }
  0xf1   : > { %v548_v1 = vpop.f32.mrf.mxu2  ;;  %v568_v37 = vpop.f32.mrf.mxu3 }
  0xf2   : > { %v885_v12 = vmul.f32 %v1648_v41, %v548_v1  ;;  %v893_v39 = vmul.f32 %v860_v36, %v568_v37 }
  0xf4   : > { %v1255_v40 = vpack.c.bf16 %v885_v12, %v884_v5  ;;  %v1275_v42 = vpack.c.bf16 %v893_v39, %v892_v38 }
  0xf6   : > { %1287 = vst [vmem:[%s1641_s9 + $0x58] sm:$0xff] %v1255_v40  }
  0xf7   : > { %1291 = vst [vmem:[%s1641_s9 + $0x78] sm:$0xff] %v1275_v42  }
  0xf8   : > { %1404 = shalt.err (!%p1401_p5)
}
  0xf9   : > { %s1458_s8 = smov 64   ;;  %s1459_s28 = smov 4  }
  0xfa   : > { %1316 = dma.vmem_to_hbm [thread:$0]  (%p1520_p4), %s972_s21, 2048, %s974_s23, %s959_s15, %s1458_s8, %s1458_s8, %s1459_s28  }
  0xfb PF: > { %p1322_p6 = scmp.ge.s32.totalorder %s1455_s17, 2  ;;  %s988_s7 = sand.u32 1, %s1435_s12  }
  0xfc   : > { %s989_s9 = scalar_lea.sflag [#allocation4], %s988_s7 }
  0xfd   : > { %p1319_p7 = pnand %p1322_p6, %p1527_p8 }
  0xff   : > { %p1320_p9 = pneg %p1319_p7 }
 0x101   : > { %1430 = dma.done.wait (%p1320_p9), %s989_s9, 2048  }
 0x102   : > { %1432 = vsyncadd (%p1320_p9), %s989_s9, 4294965248  ;;  %s16_s17 = sadd.s32 1, %s1455_s17   ;;  %s1718_s12 = smov %s1439_s13 }
 0x103   : > { %p13_p10 = scmp.ge.s32.totalorder %s16_s17, 4   ;;  %s1719_s13 = smov %s1443_s14 }
 0x104   : > { %s1720_s14 = smov %s1533_s25  ;;  %s1721_s15 = smov %s1451_s16 }
 0x105   : > { %s1722_s16 = smov %s1724_s20  ;;  %15 = sbr.rel (!%p13_p10) target bundleno = 4 (0x4), region = 79 }
 0x10a   :  { %995 = vsyncpa [#allocation4], 1 }
 0x10b   :  { %997 = vsyncpa [#allocation4 + $0x1], 1 }

</bundles_post_ra>
